<compile_context>
chip_gen: v5e
topology: v5e:2x2
jax: 0.10.0
libtpu: 0.0.40
codegen_flags: <defaults>
</compile_context>

<pallas_src>
import functools
import math

import jax
import jax.numpy as jnp
from jax import lax
from jax.experimental import pallas as pl
from jax.experimental.pallas import tpu as pltpu


def _cdiv(a, b):
    return (a + b - 1) // b


def _round_up(x, m):
    return _cdiv(x, m) * m


def _default_vmem_limit():
    # ~96 MiB on v5e/v6e (128 MiB physical), ~48 MiB on v7x (64 MiB physical).
    try:
        cap = pltpu.get_tpu_info().vmem_capacity_bytes
        return int(min(100 * 1024 * 1024, cap * 3 // 4))
    except Exception:
        return 48 * 1024 * 1024


_VMEM_LIMIT = _default_vmem_limit()


# ------------------------------ linear kernels ------------------------------

def _matmul_kernel(x_ref, w_ref, o_ref, acc_ref):
    @pl.when(pl.program_id(2) == 0)
    def _():
        acc_ref[...] = jnp.zeros_like(acc_ref)

    acc_ref[...] += jnp.dot(x_ref[...], w_ref[...],
                            preferred_element_type=jnp.float32)

    @pl.when(pl.program_id(2) == pl.num_programs(2) - 1)
    def _():
        o_ref[...] = acc_ref[...].astype(o_ref.dtype)


def _matmul_bias_kernel(x_ref, w_ref, b_ref, o_ref, acc_ref):
    @pl.when(pl.program_id(2) == 0)
    def _():
        acc_ref[...] = jnp.zeros_like(acc_ref)

    acc_ref[...] += jnp.dot(x_ref[...], w_ref[...],
                            preferred_element_type=jnp.float32)

    @pl.when(pl.program_id(2) == pl.num_programs(2) - 1)
    def _():
        o_ref[...] = (acc_ref[...] + b_ref[...].astype(jnp.float32)
                      ).astype(o_ref.dtype)


def _linear(x2d, w, b=None, *, tm=512, tn=1024, tk=1024):
    """y = x2d @ w (+ b).  x2d: [M, K], w: [K, N], b: [N] or None.

    M, N and K are all tiled (reduction axis last, 'arbitrary') with an f32 VMEM
    accumulator, so weights never have to be fully resident.
    """
    M, K = x2d.shape
    N = w.shape[1]

    # Row tile: split evenly, keep >= 2 tiles when possible (megacore on v7x).
    tm = min(_round_up(tm, 8), _round_up(M, 8))
    n_row_tiles = _cdiv(M, tm)
    if n_row_tiles == 1 and M >= 16:
        n_row_tiles = 2
    tm = _round_up(_cdiv(M, n_row_tiles), 8)

    tn = min(_round_up(tn, 128), _round_up(N, 128))
    tk = min(_round_up(tk, 128), _round_up(K, 128))

    Mp, Np, Kp = _round_up(M, tm), _round_up(N, tn), _round_up(K, tk)
    if (Mp, Kp) != (M, K):
        x2d = jnp.pad(x2d, ((0, Mp - M), (0, Kp - K)))
    if (Kp, Np) != (K, N):
        w = jnp.pad(w, ((0, Kp - K), (0, Np - N)))

    in_specs = [
        pl.BlockSpec((tm, tk), lambda i, j, k: (i, k)),   # activation tile
        pl.BlockSpec((tk, tn), lambda i, j, k: (k, j)),   # weight tile
    ]
    args = [x2d, w]
    kernel = _matmul_kernel
    if b is not None:
        if Np != N:
            b = jnp.pad(b, (0, Np - N))
        in_specs.append(pl.BlockSpec((1, tn), lambda i, j, k: (0, j)))
        args.append(b.reshape(1, Np))
        kernel = _matmul_bias_kernel

    out = pl.pallas_call(
        kernel,
        out_shape=jax.ShapeDtypeStruct((Mp, Np), x2d.dtype),
        grid_spec=pltpu.PrefetchScalarGridSpec(
            num_scalar_prefetch=0,
            grid=(Mp // tm, Np // tn, Kp // tk),
            in_specs=in_specs,
            out_specs=pl.BlockSpec((tm, tn), lambda i, j, k: (i, j)),
            scratch_shapes=[pltpu.VMEM((tm, tn), jnp.float32)],
        ),
        compiler_params=pltpu.CompilerParams(
            dimension_semantics=("parallel", "parallel", "arbitrary"),
            vmem_limit_bytes=_VMEM_LIMIT),
    )(*args)
    if (Mp, Np) != (M, N):
        out = out[:M, :N]
    return out


# -------------------------- causal flash attention --------------------------

def _causal_pair_tables(nq):
    """SMEM tables packing the lower triangle of (q_tile, k_tile) pairs."""
    qi = [i for i in range(nq) for _ in range(i + 1)]
    ki = [j for i in range(nq) for j in range(i + 1)]
    return (jnp.asarray(qi, dtype=jnp.int32),
            jnp.asarray(ki, dtype=jnp.int32))


def _flash_attn_kernel(qi_tab, ki_tab, q_ref, k_ref, v_ref, o_ref,
                       m_sc, l_sc, acc_sc, *, sm_scale, pair_axis):
    p = pl.program_id(pair_axis)
    qi = qi_tab[p]
    ki = ki_tab[p]
    tq = q_ref.shape[0]
    tk = k_ref.shape[0]

    @pl.when(ki == 0)
    def _():
        m_sc[...] = jnp.full_like(m_sc, -jnp.inf)
        l_sc[...] = jnp.zeros_like(l_sc)
        acc_sc[...] = jnp.zeros_like(acc_sc)

    # Fold the softmax scale into the (tq, Dh) query tile instead of scaling the
    # (tq, tk) score matrix on every k step.
    q = q_ref[...] * sm_scale
    k = k_ref[...]
    v = v_ref[...]
    s = lax.dot_general(q, k, (((1,), (1,)), ((), ())),
                        preferred_element_type=jnp.float32)          # [tq, tk]

    def _update(scores):
        m_prev = m_sc[...]
        m_new = jnp.maximum(m_prev, scores.max(axis=-1, keepdims=True))
        alpha = jnp.exp(m_prev - m_new)
        p_exp = jnp.exp(scores - m_new)
        l_sc[...] = alpha * l_sc[...] + p_exp.sum(axis=-1, keepdims=True)
        acc_sc[...] = alpha * acc_sc[...] + lax.dot_general(
            p_exp.astype(v.dtype), v, (((1,), (0,)), ((), ())),
            preferred_element_type=jnp.float32)
        m_sc[...] = m_new

    @pl.when(ki < qi)                    # strictly below diagonal: no masking needed
    def _():
        _update(s)

    @pl.when(ki == qi)                   # diagonal tile: mask + epilogue (it is the
    def _():                             # last k step for this q tile in the packing)
        rows = lax.broadcasted_iota(jnp.int32, (tq, 1), 0)
        cols = lax.broadcasted_iota(jnp.int32, (1, tk), 1)
        _update(jnp.where(cols <= rows, s, -jnp.inf))
        o_ref[...] = (acc_sc[...] * pl.reciprocal(l_sc[...], approx=True)
                      ).astype(o_ref.dtype)


def _attn_scratch(t, dh):
    return [pltpu.VMEM((t, 1), jnp.float32),      # running max
            pltpu.VMEM((t, 1), jnp.float32),      # running denominator
            pltpu.VMEM((t, dh), jnp.float32)]     # running numerator


def _flash_attention_bh(q, k, v, *, sm_scale, seq_tile):
    """Fallback layout: q, k, v [B*H, S, Dh] -> causal attention out [B*H, S, Dh]."""
    BH, S, Dh = q.shape
    t = min(_round_up(seq_tile, 8), _round_up(S, 8))
    Sp = _round_up(S, t)
    if Sp != S:
        pad = ((0, 0), (0, Sp - S), (0, 0))
        q, k, v = jnp.pad(q, pad), jnp.pad(k, pad), jnp.pad(v, pad)
    nq = Sp // t
    qi_tab, ki_tab = _causal_pair_tables(nq)
    n_pairs = int(qi_tab.shape[0])

    kernel = functools.partial(_flash_attn_kernel, sm_scale=sm_scale, pair_axis=1)
    out = pl.pallas_call(
        kernel,
        out_shape=jax.ShapeDtypeStruct((BH, Sp, Dh), q.dtype),
        grid_spec=pltpu.PrefetchScalarGridSpec(
            num_scalar_prefetch=2,
            grid=(BH, n_pairs),
            in_specs=[
                pl.BlockSpec((None, t, Dh), lambda b, p, qt, kt: (b, qt[p], 0)),
                pl.BlockSpec((None, t, Dh), lambda b, p, qt, kt: (b, kt[p], 0)),
                pl.BlockSpec((None, t, Dh), lambda b, p, qt, kt: (b, kt[p], 0)),
            ],
            out_specs=pl.BlockSpec((None, t, Dh), lambda b, p, qt, kt: (b, qt[p], 0)),
            scratch_shapes=_attn_scratch(t, Dh),
        ),
        compiler_params=pltpu.CompilerParams(
            dimension_semantics=("parallel", "arbitrary"),
            vmem_limit_bytes=_VMEM_LIMIT),
    )(qi_tab, ki_tab, q, k, v)
    if Sp != S:
        out = out[:, :S, :]
    return out


def _flash_attention_fused_layout(qkv, *, num_heads, sm_scale, seq_tile):
    """Transpose-free layout (requires head_dim % 128 == 0).

    qkv: [B, S, 3*Dout] with columns [Q heads | K heads | V heads].
    Returns ctx [B, S, Dout] with heads packed in the last dim (lane-dense stores).
    """
    B, S, threeD = qkv.shape
    Dout = threeD // 3
    H = num_heads
    Dh = Dout // H
    t = min(_round_up(seq_tile, 8), _round_up(S, 8))
    Sp = _round_up(S, t)
    if Sp != S:
        qkv = jnp.pad(qkv, ((0, 0), (0, Sp - S), (0, 0)))
    nq = Sp // t
    qi_tab, ki_tab = _causal_pair_tables(nq)
    n_pairs = int(qi_tab.shape[0])

    kernel = functools.partial(_flash_attn_kernel, sm_scale=sm_scale, pair_axis=2)
    out = pl.pallas_call(
        kernel,
        out_shape=jax.ShapeDtypeStruct((B, Sp, Dout), qkv.dtype),
        grid_spec=pltpu.PrefetchScalarGridSpec(
            num_scalar_prefetch=2,
            grid=(B, H, n_pairs),
            in_specs=[
                pl.BlockSpec((None, t, Dh),
                             lambda b, h, p, qt, kt: (b, qt[p], h)),
                pl.BlockSpec((None, t, Dh),
                             lambda b, h, p, qt, kt: (b, kt[p], H + h)),
                pl.BlockSpec((None, t, Dh),
                             lambda b, h, p, qt, kt: (b, kt[p], 2 * H + h)),
            ],
            out_specs=pl.BlockSpec((None, t, Dh),
                                   lambda b, h, p, qt, kt: (b, qt[p], h)),
            scratch_shapes=_attn_scratch(t, Dh),
        ),
        compiler_params=pltpu.CompilerParams(
            dimension_semantics=("parallel", "parallel", "arbitrary"),
            vmem_limit_bytes=_VMEM_LIMIT),
    )(qi_tab, ki_tab, qkv, qkv, qkv)
    if Sp != S:
        out = out[:, :S, :]
    return out


# ------------------------------ full module ---------------------------------

def fuse_qkv_params(w_query, w_key, w_value, b_query=None, b_key=None, b_value=None):
    """One-time parameter prep (hoisted out of the forward path)."""
    w_qkv = jnp.concatenate([w_query, w_key, w_value], axis=1)
    b_qkv = None
    if b_query is not None:
        b_qkv = jnp.concatenate([b_query, b_key, b_value], axis=0)
    return w_qkv, b_qkv


def multi_head_attention(x, w_qkv, w_proj, b_proj, *, num_heads, b_qkv=None,
                         row_tile=512, seq_tile=512):
    """Causal multi-head self-attention matching the PyTorch module's forward.

    Weights are stored [in, out] (transpose of nn.Linear.weight), so y = x @ W + b
    reproduces nn.Linear's y = x @ W.T + b.  w_qkv is the fused [Din, 3*Dout] weight.
    """
    B, S, Din = x.shape
    Dout = w_qkv.shape[1] // 3
    Dh = Dout // num_heads
    sm_scale = 1.0 / math.sqrt(Dh)

    x2d = x.reshape(B * S, Din)
    qkv2d = _linear(x2d, w_qkv, b_qkv, tm=row_tile)               # [B*S, 3*Dout]

    if Dh % 128 == 0:
        # Transpose-free path: attention reads head tiles straight out of qkv2d and
        # writes a lane-dense [B, S, H*Dh] context (free reshape into the projection).
        ctx2d = _flash_attention_fused_layout(
            qkv2d.reshape(B, S, 3 * Dout), num_heads=num_heads,
            sm_scale=sm_scale, seq_tile=seq_tile).reshape(B * S, Dout)
    else:
        # Small head_dim fallback: explicit [B*H, S, Dh] layout (keeps the last block
        # dim equal to the full array dim, satisfying TPU tiling rules).
        qkv = qkv2d.reshape(B, S, 3, num_heads, Dh).transpose(2, 0, 3, 1, 4)
        q = qkv[0].reshape(B * num_heads, S, Dh)
        k = qkv[1].reshape(B * num_heads, S, Dh)
        v = qkv[2].reshape(B * num_heads, S, Dh)
        ctx = _flash_attention_bh(q, k, v, sm_scale=sm_scale, seq_tile=seq_tile)
        ctx2d = (ctx.reshape(B, num_heads, S, Dh)
                    .transpose(0, 2, 1, 3)
                    .reshape(B * S, Dout))

    out2d = _linear(ctx2d, w_proj, b_proj, tm=row_tile)            # [B*S, Dout]
    return out2d.reshape(B, S, Dout)


# ------------------------------ pure-JAX reference ---------------------------

def _reference_mha(x, w_q, w_k, w_v, w_proj, b_proj, *, num_heads,
                   b_q=None, b_k=None, b_v=None):
    B, S, _ = x.shape
    Dout = w_q.shape[1]
    Dh = Dout // num_heads
    xf = x.astype(jnp.float32)
    q = xf @ w_q.astype(jnp.float32)
    k = xf @ w_k.astype(jnp.float32)
    v = xf @ w_v.astype(jnp.float32)
    if b_q is not None:
        q, k, v = q + b_q, k + b_k, v + b_v
    q = q.reshape(B, S, num_heads, Dh).transpose(0, 2, 1, 3)
    k = k.reshape(B, S, num_heads, Dh).transpose(0, 2, 1, 3)
    v = v.reshape(B, S, num_heads, Dh).transpose(0, 2, 1, 3)
    s = jnp.einsum("bhqd,bhkd->bhqk", q, k)
    mask = jnp.triu(jnp.ones((S, S), dtype=bool), k=1)
    s = jnp.where(mask[None, None], -jnp.inf, s)
    attn = jax.nn.softmax(s / math.sqrt(Dh), axis=-1)
    ctx = jnp.einsum("bhqk,bhkd->bhqd", attn, v)
    ctx = ctx.transpose(0, 2, 1, 3).reshape(B, S, Dout)
    return (ctx @ w_proj.astype(jnp.float32) + b_proj.astype(jnp.float32)
            ).astype(x.dtype)


# ------------------------------ self-test ------------------------------------

def _run_case(*, batch, seq, d_in, d_out, num_heads, qkv_bias, seq_tile):
    key = jax.random.PRNGKey(0)
    keys = jax.random.split(key, 9)
    x = jax.random.normal(keys[0], (batch, seq, d_in), dtype=jnp.float32)

    lim_in = 1.0 / math.sqrt(d_in)
    lim_out = 1.0 / math.sqrt(d_out)
    w_q = jax.random.uniform(keys[1], (d_in, d_out), minval=-lim_in, maxval=lim_in)
    w_k = jax.random.uniform(keys[2], (d_in, d_out), minval=-lim_in, maxval=lim_in)
    w_v = jax.random.uniform(keys[3], (d_in, d_out), minval=-lim_in, maxval=lim_in)
    w_o = jax.random.uniform(keys[4], (d_out, d_out), minval=-lim_out, maxval=lim_out)
    b_o = jax.random.uniform(keys[5], (d_out,), minval=-lim_out, maxval=lim_out)
    if qkv_bias:
        b_q = jax.random.uniform(keys[6], (d_out,), minval=-lim_in, maxval=lim_in)
        b_k = jax.random.uniform(keys[7], (d_out,), minval=-lim_in, maxval=lim_in)
        b_v = jax.random.uniform(keys[8], (d_out,), minval=-lim_in, maxval=lim_in)
    else:
        b_q = b_k = b_v = None

    w_qkv, b_qkv = fuse_qkv_params(w_q, w_k, w_v, b_q, b_k, b_v)
    out = multi_head_attention(x, w_qkv, w_o, b_o, num_heads=num_heads,
                               b_qkv=b_qkv, seq_tile=seq_tile)
    out = jax.block_until_ready(out)

    ref = _reference_mha(x, w_q, w_k, w_v, w_o, b_o, num_heads=num_heads,
                         b_q=b_q, b_k=b_k, b_v=b_v)
    assert out.shape == (batch, seq, d_out)
    max_err = jnp.max(jnp.abs(out - ref))
    assert jnp.allclose(out, ref, atol=5e-3, rtol=5e-3), (
        f"mismatch vs reference (max abs err {max_err}) for "
        f"B={batch} S={seq} d_in={d_in} d_out={d_out} H={num_heads}")


if __name__ == "__main__":
    # Matches MultiHeadAttention(d_in=32, d_out=32, num_heads=4, dropout=0.0,
    #                            context_length=8, qkv_bias=False) -- small-Dh fallback.
    _run_case(batch=2, seq=8, d_in=32, d_out=32, num_heads=4,
              qkv_bias=False, seq_tile=512)

    # Exercises the transpose-free path (head_dim = 128), multi-tile causal packing,
    # ragged-sequence padding and the qkv_bias branch.
    _run_case(batch=2, seq=320, d_in=128, d_out=256, num_heads=2,
              qkv_bias=True, seq_tile=128)

    print("KERNEL_OK")
</pallas_src>

<mosaic_0001>
module attributes {stable_mosaic.version = 11 : i64} {
  func.func @_matmul_kernel(%arg0: i32, %arg1: i32, %arg2: i32, %arg3: memref<8x128xf32, #tpu.memory_space<vmem>>, %arg4: memref<128x128xf32, #tpu.memory_space<vmem>>, %arg5: memref<8x128xf32, #tpu.memory_space<vmem>>, %arg6: memref<8x128xf32, #tpu.memory_space<vmem>>) attributes {dimension_semantics = [#tpu.dimension_semantics<parallel>, #tpu.dimension_semantics<parallel>, #tpu.dimension_semantics<arbitrary>], iteration_bounds = array<i64: 2, 1, 1>, scalar_prefetch = 0 : i64, scratch_operands = 1 : i64, tpu.core_type = #tpu.core_type<tc>, window_params = [{transform_indices = @transform_0, window_bounds = array<i64: 8, 128>}, {transform_indices = @transform_1, window_bounds = array<i64: 128, 128>}, {transform_indices = @transform_2, window_bounds = array<i64: 8, 128>}]} {
    %c0_i32 = arith.constant 0 : i32
    %0 = arith.cmpi eq, %arg2, %c0_i32 : i32
    %1 = arith.extui %0 : i1 to i32
    %c0_i32_0 = arith.constant 0 : i32
    %2 = arith.cmpi ne, %1, %c0_i32_0 : i32
    scf.if %2 {
      %cst_10 = arith.constant 0.000000e+00 : f32
      %12 = vector.broadcast %cst_10 : f32 to vector<8x128xf32>
      %c0_11 = arith.constant 0 : index
      %c0_12 = arith.constant 0 : index
      %13 = vector.load %arg6[%c0_11, %c0_12] : memref<8x128xf32, #tpu.memory_space<vmem>>, vector<8x128xf32>
      tpu.vector_store %arg6[%c0_11, %c0_12], %12 {strides = array<i32>} : memref<8x128xf32, #tpu.memory_space<vmem>>, vector<8x128xf32>,
    } else {
    }
    %c0 = arith.constant 0 : index
    %c0_1 = arith.constant 0 : index
    %3 = vector.load %arg6[%c0, %c0_1] : memref<8x128xf32, #tpu.memory_space<vmem>>, vector<8x128xf32>
    %c0_2 = arith.constant 0 : index
    %c0_3 = arith.constant 0 : index
    %4 = vector.load %arg3[%c0_2, %c0_3] : memref<8x128xf32, #tpu.memory_space<vmem>>, vector<8x128xf32>
    %c0_4 = arith.constant 0 : index
    %c0_5 = arith.constant 0 : index
    %5 = vector.load %arg4[%c0_4, %c0_5] : memref<128x128xf32, #tpu.memory_space<vmem>>, vector<128x128xf32>
    %cst = arith.constant dense<0.000000e+00> : vector<8x128xf32>
    %6 = tpu.matmul %4, %5, %cst {dimension_numbers = #tpu.dot_dimension_numbers<[1], [0], [0], [1], [0, 0, 1, 1], [], []>} : vector<8x128xf32>, vector<128x128xf32>, vector<8x128xf32> -> vector<8x128xf32>
    %7 = arith.addf %3, %6 : vector<8x128xf32>
    %c0_6 = arith.constant 0 : index
    %c0_7 = arith.constant 0 : index
    %8 = vector.load %arg6[%c0_6, %c0_7] : memref<8x128xf32, #tpu.memory_space<vmem>>, vector<8x128xf32>
    tpu.vector_store %arg6[%c0_6, %c0_7], %7 {strides = array<i32>} : memref<8x128xf32, #tpu.memory_space<vmem>>, vector<8x128xf32>,
    %c0_i32_8 = arith.constant 0 : i32
    %9 = arith.cmpi eq, %arg2, %c0_i32_8 : i32
    %10 = arith.extui %9 : i1 to i32
    %c0_i32_9 = arith.constant 0 : i32
    %11 = arith.cmpi ne, %10, %c0_i32_9 : i32
    scf.if %11 {
      %c0_10 = arith.constant 0 : index
      %c0_11 = arith.constant 0 : index
      %12 = vector.load %arg6[%c0_10, %c0_11] : memref<8x128xf32, #tpu.memory_space<vmem>>, vector<8x128xf32>
      %c0_12 = arith.constant 0 : index
      %c0_13 = arith.constant 0 : index
      %13 = vector.load %arg5[%c0_12, %c0_13] : memref<8x128xf32, #tpu.memory_space<vmem>>, vector<8x128xf32>
      tpu.vector_store %arg5[%c0_12, %c0_13], %12 {strides = array<i32>} : memref<8x128xf32, #tpu.memory_space<vmem>>, vector<8x128xf32>,
    } else {
    }
    return
  }
  func.func @transform_0(%arg0: i32, %arg1: i32, %arg2: i32) -> (i32, i32) {
    %c0_i32 = arith.constant 0 : i32
    return %arg0, %arg2 : i32, i32
  }
  func.func @transform_1(%arg0: i32, %arg1: i32, %arg2: i32) -> (i32, i32) {
    %c0_i32 = arith.constant 0 : i32
    return %arg2, %arg1 : i32, i32
  }
  func.func @transform_2(%arg0: i32, %arg1: i32, %arg2: i32) -> (i32, i32) {
    %c0_i32 = arith.constant 0 : i32
    return %arg0, %arg1 : i32, i32
  }
}

</mosaic_0001>

<bundles_post_ra>
// kernel: tpu_custom_call.1
= control target key start
LH: loop header
LB: loop body
LE: loop exit
PB: predicated region body
PF: predicated region fallthrough
CT: control target
= control target key end

     0   :  { %7 = vsyncpa [#allocation4], 0  ;;  %s784_s0 = inlined_call_operand.hbm [shape: f32[16,128], index: 0, kind: input, shape index: {}]   ;;  %s785_s1 = inlined_call_operand.hbm [shape: f32[128,128], index: 1, kind: input, shape index: {}]   ;;  %s786_s2 = inlined_call_operand.hbm [shape: f32[16,128], index: 2, kind: output, shape index: {}]  }
   0x1   :  { %9 = vsyncpa [#allocation4 + $0x1], 0 }
   0x2   :  { %10 = vsyncpa [#allocation7], 0 }
   0x3   :  { %11 = vsyncpa [#allocation5], 0 }
   0x4   :  { %13 = vsyncpa [#allocation5 + $0x1], 0  ;;  %s634_s9 = smov 0   ;;  %s636_s10 = smov 0  }
   0x5   :  { %s638_s11 = smov 0   ;;  %s640_s12 = smov 0  }
   0x6   :  { %s642_s13 = smov 0   ;;  %s644_s14 = smov 0  }
   0x7 LB: > { %s378_s15 = sadd.s32 4294967295, %s614_s14   ;;  %p380_p0 = scmp.ge.s32.totalorder %s614_s14, 1  ;;  %s614_s14 = sphi %s644_s14, %s19_s14   ;;  %s610_s13 = sphi %s642_s13, %s797_s13   ;;  %s606_s12 = sphi %s640_s12, %s796_s12   ;;  %s602_s11 = sphi %s638_s11, %s795_s11   ;;  %s598_s10 = sphi %s636_s10, %s794_s10   ;;  %s594_s9 = sphi %s634_s9, %s793_s9  }
   0x8   : > { %p666_p1 = scmp.eq.s32.totalorder %s378_s15, 0  ;;  %p127_p2 = scmp.lt.s32.totalorder %s614_s14, 3 }
   0x9   : > { %s142_s19 = sshll.u32 %s785_s1, 4  ;;  %s616_s21 = smov [#allocation6]   ;;  %s143_s19 = int_to_ptr.hbm [resolvable:$true] %s142_s19 }
   0xa   : > { %p674_p3 = pnand %p380_p0, %p127_p2  ;;  %s144_s22 = sshll.u32 %s616_s21, 4  ;;  %s145_s22 = int_to_ptr.vmem [resolvable:$true] %s144_s22 }
   0xb   : > { %p382_p6 = scmp.ge.s32.totalorder %s614_s14, 2  ;;  %s617_s23 = smov 128  }
   0xc   : > { %p401_p4 = pneg %p674_p3  ;;  %s618_s24 = smov 8  }
   0xd   : > { %s379_s25 = sadd.s32 4294967294, %s614_s14   ;;  %s38_s26 = sadd.s32 1, %s610_s13 }
   0xe   : > { %p402_p5 = pnand %p401_p4, %p666_p1  ;;  %s47_s27 = sadd.s32 1, %s602_s11 }
   0xf   : > { %p40_p7 = scmp.ge.s32.totalorder %s38_s26, 2  ;;  %p54_p8 = scmp.ne.s32.totalorder %s602_s11, %s598_s10 }
  0x10   : > { %404 = dma.hbm_to_vmem [thread:$0]  (!%p402_p5), %s143_s19, 2048, %s145_s22, [#allocation7], %s617_s23, %s617_s23, %s618_s24  }
  0x11   : > { %p55_p9 = scmp.eq.s32.totalorder %s614_s14, 0  ;;  %p60_p10 = scmp.ne.s32.totalorder %s598_s10, %s594_s9 }
  0x12   : > { %s799_s26 = smov (%p40_p7, %s38_s26), 0  ;;  %p114_p13 = scmp.eq.s32.totalorder %s378_s15, 1 }
  0x13   : > { %p693_p11 = por %p55_p9, %p54_p8  ;;  %p699_p12 = por %p666_p1, %p60_p10 }
  0x14   : > { %s42_s30 = ssub.s32 %s610_s13, %s799_s26  ;;  %p120_p2 = scmp.eq.s32.totalorder %s379_s25, 1 }
  0x15   : > { %p45_p0 = scmp.eq.s32.totalorder %s42_s30, 0  ;;  %p705_p4 = por %p114_p13, %p54_p8 }
  0x16   : > { %p414_p5 = scmp.lt.s32.totalorder %s614_s14, 2  ;;  %p713_p7 = por %p120_p2, %p60_p10 }
  0x17   : > { %s711_s4 = scalar_select %p45_p0, %s602_s11, %s47_s27  }
  0x18   : > { %s158_s6 = sand.u32 1, %s602_s11   ;;  %s384_s8 = sshll.u32 %s610_s13, 3 }
  0x19   : > { %s383_s7 = sshll.u32 %s158_s6, 3  ;;  %s167_s15 = scalar_lea.hbm %s784_s0, %s384_s8 }
  0x1a   : > { %s162_s19 = scalar_lea.vmem [#allocation3], %s383_s7  ;;  %s169_s22 = sshll.u32 %s167_s15, 4  ;;  %s170_s22 = int_to_ptr.hbm [resolvable:$true] %s169_s22 }
  0x1b   : > { %s171_s21 = sshll.u32 %s162_s19, 4  ;;  %p406_p8 = pnand %p414_p5, %p693_p11  ;;  %s172_s21 = int_to_ptr.vmem [resolvable:$true] %s171_s21 }
  0x1c   : > { %s159_s23 = scalar_lea.sflag [#allocation4], %s158_s6  ;;  %180 = sbr.rel (%p674_p3) target bundleno = 197 (0xc5), region = 28 }
  0x1d   : > { %408 = dma.hbm_to_vmem [thread:$0]  (!%p406_p8), %s170_s22, 128, %s172_s21, %s159_s23  }
  0x1e   : > { %s727_s24 = sand.u32 (!%p674_p3), 1, %s598_s10  }
  0x1f   : > { %s386_s25 = sshll.u32 (!%p674_p3), %s727_s24, 3  ;;  %s183_s27 = scalar_lea.sflag (!%p674_p3), [#allocation4], %s727_s24 }
  0x20   : > { %s733_s30 = scalar_lea.vmem (!%p674_p3), [#allocation3], %s386_s25 }
  0x21   : > { %581 = dma.done.wait (%p699_p12), %s183_s27, 128  }
  0x22   : > { %583 = vsyncadd (%p699_p12), %s183_s27, 4294967168 }
  0x23   : > { %585 = dma.done.wait (%p666_p1), [#allocation7], 2048  }
  0x24   : > { %587 = vsyncadd (%p666_p1), [#allocation7], 4294965248  ;;  %v236_v0 = vld [vmem:[#allocation6 + $0x78] sm:$0xff]  ;;  %v235_v1 = vld [vmem:[#allocation6 + $0x70] sm:$0xff]  ;;  %s390_s16 = sshll.u32 %s606_s12, 3  ;;  %s212_s6 = scalar_lea.vmem [#allocation8], %s386_s25 }
  0x25   : > { %237 = vmatpush.msra.mxu0 %v236_v0  ;;  %v234_v2 = vld [vmem:[#allocation6 + $0x68] sm:$0xff]  ;;  %v233_v3 = vld [vmem:[#allocation6 + $0x60] sm:$0xff]  ;;  %v232_v4 = vld [vmem:[#allocation6 + $0x58] sm:$0xff]  ;;  %s276_s29 = scalar_lea.hbm %s786_s2, %s390_s16  ;;  %s278_s7 = sshll.u32 %s212_s6, 4  ;;  %s279_s7 = int_to_ptr.vmem [resolvable:$true] %s278_s7 }
  0x26   : > { %v231_v5 = vld [vmem:[#allocation6 + $0x50] sm:$0xff]  ;;  %v230_v6 = vld [vmem:[#allocation6 + $0x48] sm:$0xff]  ;;  %v229_v7 = vld [vmem:[#allocation6 + $0x40] sm:$0xff]  ;;  %s280_s8 = sshll.u32 %s276_s29, 4  ;;  %s265_s17 = scalar_lea.sflag [#allocation5], %s727_s24  ;;  %s281_s8 = int_to_ptr.hbm [resolvable:$true] %s280_s8 }
  0x27   : > { %238 = vmatpush.msra.mxu0 %v235_v1  ;;  %v228_v8 = vld [vmem:[#allocation6 + $0x38] sm:$0xff]  ;;  %v227_v9 = vld [vmem:[#allocation6 + $0x30] sm:$0xff]  ;;  %v226_v10 = vld [vmem:[#allocation6 + $0x28] sm:$0xff]  ;;  %s542_s18 = sshra.s32 %s281_s8, 4  ;;  %s548_s21 = scalar_lea.hbm %s786_s2, 16  ;;  %s543_s18 = int_to_ptr.hbm [resolvable:$true] %s542_s18 }
  0x28   : > { %v225_v11 = vld [vmem:[#allocation6 + $0x20] sm:$0xff]  ;;  %v224_v12 = vld [vmem:[#allocation6 + $0x18] sm:$0xff]  ;;  %v223_v13 = vld [vmem:[#allocation6 + $0x10] sm:$0xff]  ;;  %s544_s15 = scalar_lea.hbm %s543_s18, 8  ;;  %p549_p10 = scmp.lt.s32.totalorder %s543_s18, %s786_s2 }
  0x29   : > { %239 = vmatpush.msra.mxu0 %v234_v2  ;;  %v222_v14 = vld [vmem:[#allocation6 + $0x8] sm:$0xff]  ;;  %v221_v15 = vld [vmem:[#allocation6] sm:$0xff]  ;;  %v220_v16 = vld [vmem:[%s733_s30] sm:$0xff]  ;;  %p545_p1 = scmp.ne.s32.totalorder %s543_s18, %s544_s15  ;;  %p550_p11 = scmp.lt.s32.totalorder %s548_s21, %s544_s15 }
  0x2b   : > { %240 = vmatpush.msra.mxu0 %v233_v3  ;;  %p546_p3 = pnand %p545_p1, %p705_p4  ;;  %p551_p12 = por %p550_p11, %p549_p10 }
  0x2d   : > { %241 = vmatpush.msra.mxu0 %v232_v4  ;;  %p547_p9 = pneg %p546_p3 }
  0x2f   : > { %242 = vmatpush.msra.mxu0 %v231_v5  ;;  %p552_p13 = pnand %p551_p12, %p547_p9 }
  0x31   : > { %243 = vmatpush.msra.mxu0 %v230_v6 }
  0x33   : > { %244 = vmatpush.msra.mxu0 %v229_v7 }
  0x35   : > { %245 = vmatpush.msra.mxu0 %v228_v8 }
  0x37   : > { %246 = vmatpush.msra.mxu0 %v227_v9 }
  0x39   : > { %247 = vmatpush.msra.mxu0 %v226_v10 }
  0x3b   : > { %248 = vmatpush.msra.mxu0 %v225_v11 }
  0x3d   : > { %249 = vmatpush.msra.mxu0 %v224_v12 }
  0x3f   : > { %250 = vmatpush.msra.mxu0 %v223_v13 }
  0x41   : > { %251 = vmatpush.msra.mxu0 %v222_v14 }
  0x43   : > { %252 = vmatpush.msra.mxu0 %v221_v15 }
  0x44   : > { %253 = vmatmul.f32.vlgmr.msra.gmra.mxu0 %v220_v16 }
  0xc1   : > { %v254_v17 = vpop.f32.mrf.mxu0 }
  0xc2   : > { %263 = vst [vmem:[%s212_s6] sm:$0xff] %v254_v17 }
  0xc3   : > { %555 = shalt.err (!%p552_p13)
}
  0xc4   : > { %399 = dma.vmem_to_hbm [thread:$0]  (%p705_p4), %s279_s7, 128, %s281_s8, %s265_s17  }
  0xc5 PF: > { %s292_s24 = sand.u32 1, %s594_s9   ;;  %p410_p0 = pnand %p382_p6, %p713_p7 }
  0xc6   : > { %s293_s25 = scalar_lea.sflag [#allocation5], %s292_s24 }
  0xc7   : > { %p411_p2 = pneg %p410_p0 }
  0xc9   : > { %589 = dma.done.wait (%p411_p2), %s293_s25, 128  }
  0xca   : > { %591 = vsyncadd (%p411_p2), %s293_s25, 4294967168  ;;  %s19_s14 = sadd.s32 1, %s614_s14   ;;  %s793_s9 = smov %s598_s10 }
  0xcb   : > { %p16_p5 = scmp.ge.s32.totalorder %s19_s14, 4   ;;  %s794_s10 = smov %s602_s11 }
  0xcc   : > { %s795_s11 = smov %s711_s4  ;;  %s796_s12 = smov %s610_s13 }
  0xcd   : > { %s797_s13 = smov %s799_s26  ;;  %18 = sbr.rel (!%p16_p5) target bundleno = 7 (0x7), region = 86 }
  0xd2   :  { %299 = vsyncpa [#allocation4], 1 }
  0xd3   :  { %301 = vsyncpa [#allocation4 + $0x1], 1 }
  0xd4   :  { %302 = vsyncpa [#allocation7], 1 }
  0xd5   :  { %303 = vsyncpa [#allocation5], 1 }
  0xd6   :  { %305 = vsyncpa [#allocation5 + $0x1], 1 }

</bundles_post_ra>
